<compile_context>
chip_gen: v7x
topology: tpu7x:2x2x1
jax: 0.10.0
libtpu: 0.0.40
codegen_flags: <defaults>
</compile_context>

<pallas_src>
import jax
import jax.numpy as jnp
from jax.experimental import pallas as pl
from jax.experimental.pallas import tpu as pltpu


def _trigger_kernel(x_ref, rowmask_ref, trig_ref, colmask_ref, o_ref):
    x = x_ref[...]                                   # (tn, cw)
    gate = rowmask_ref[...] * colmask_ref[...]       # (tn,1)*(1,cw) -> (tn,cw), exactly 0/1
    upd = jnp.minimum(x + trig_ref[...], 1.0)        # x += trigger ; x = 1 - relu(1 - x)
    o_ref[...] = upd * gate + x * (1.0 - gate)       # exact select via 0/1 arithmetic


def trigger_selected_node_forward(x, able, trigger_range, trigger, *, max_tile_rows=512):
    """x: (N, F) float, able: (N,) bool, trigger_range: (lo, hi), trigger: (hi-lo,) float."""
    N, F = x.shape
    lo, hi = int(trigger_range[0]), int(trigger_range[1])
    if hi <= lo:
        return x
    itemsize = jnp.dtype(x.dtype).itemsize
    budget = 2 * 1024 * 1024          # bytes per x tile (in+out double-buffered ~4x this)

    # --- row tiling --------------------------------------------------------
    tile_n = N if N <= max_tile_rows else max_tile_rows   # max_tile_rows is a multiple of 8

    # --- lane-aligned column window ----------------------------------------
    if F % 128 == 0:
        cb0 = lo // 128                      # first 128-lane block of the window
        cb1 = (hi + 127) // 128              # one past the last block
        n_cb = cb1 - cb0
        win_lo, win_w = cb0 * 128, n_cb * 128
        # Widest column chunk (in 128-lane blocks) that tiles the window, stays
        # aligned with the window start, and keeps the x tile inside the budget.
        cwb = 1
        for d in range(n_cb, 0, -1):
            if n_cb % d == 0 and cb0 % d == 0 and tile_n * d * 128 * itemsize <= budget:
                cwb = d
                break
        cw = cwb * 128
        n_col_steps = n_cb // cwb
        col0_blk = cb0 // cwb
    else:
        # TODO(synk): F not a multiple of 128 -> stream full-width rows (still in-place).
        win_lo, win_w = 0, F
        cw, n_col_steps, col0_blk = F, 1, 0
        max_rows = max(8, (budget // (F * itemsize)) // 8 * 8)
        if tile_n > max_rows:
            tile_n = max_rows

    grid = (pl.cdiv(N, tile_n), n_col_steps)

    # --- small replicated operands (window-local) ---------------------------
    col_ids = jnp.arange(win_w) + win_lo
    colmask = ((col_ids >= lo) & (col_ids < hi)).astype(x.dtype)[None, :]          # (1, win_w)
    trig_full = (jnp.zeros((win_w,), x.dtype)
                 .at[lo - win_lo: hi - win_lo].set(trigger.astype(x.dtype)))[None, :]
    rowmask = able.astype(x.dtype)[:, None]                                        # (N, 1)

    out = pl.pallas_call(
        _trigger_kernel,
        out_shape=jax.ShapeDtypeStruct((N, F), x.dtype),
        grid_spec=pltpu.PrefetchScalarGridSpec(
            num_scalar_prefetch=0,
            grid=grid,
            in_specs=[
                pl.BlockSpec((tile_n, cw), lambda i, j: (i, col0_blk + j)),  # x window tile
                pl.BlockSpec((tile_n, 1), lambda i, j: (i, 0)),              # row mask
                pl.BlockSpec((1, cw), lambda i, j: (0, j)),                  # trigger slice
                pl.BlockSpec((1, cw), lambda i, j: (0, j)),                  # col mask slice
            ],
            out_specs=pl.BlockSpec((tile_n, cw), lambda i, j: (i, col0_blk + j)),
        ),
        input_output_aliases={0: 0},   # write the window in place; rest of x untouched
        compiler_params=pltpu.CompilerParams(
            dimension_semantics=("parallel", "parallel"),
            vmem_limit_bytes=32 * 1024 * 1024),
    )(x, rowmask, trig_full, colmask)
    return out


def _reference(x, able, trigger_range, trigger):
    lo, hi = trigger_range
    sub = x[:, lo:hi] + trigger[None, :]
    sub = 1.0 - jnp.maximum(0.0, 1.0 - sub)          # 1 - relu(1 - v)
    sub = jnp.where(able[:, None], sub, x[:, lo:hi])
    return x.at[:, lo:hi].set(sub)


if __name__ == "__main__":
    # -- test 1: shape from the module spec (window happens to cover all of F) --
    k_x, k_able, k_trig = jax.random.split(jax.random.PRNGKey(0), 3)
    N, F = 16, 256
    trigger_range = (64, 192)
    lo, hi = trigger_range
    x = jax.random.uniform(k_x, (N, F), dtype=jnp.float32)
    able = jax.random.bernoulli(k_able, 0.5, (N,))
    trigger = jax.random.uniform(k_trig, (hi - lo,), dtype=jnp.float32)

    ref = _reference(x, able, trigger_range, trigger)
    out = jax.block_until_ready(trigger_selected_node_forward(x, able, trigger_range, trigger))
    assert jnp.allclose(out, ref, atol=1e-6), "test 1 mismatch vs reference"

    # -- test 2: narrow unaligned trigger band inside a wider feature matrix,
    #            rows not divisible by the row tile (window + edge masking + aliasing) --
    k_x2, k_able2, k_trig2 = jax.random.split(jax.random.PRNGKey(1), 3)
    N2, F2 = 72, 512
    trigger_range2 = (200, 330)
    lo2, hi2 = trigger_range2
    x2 = jax.random.uniform(k_x2, (N2, F2), dtype=jnp.float32) * 2.0   # values > 1 outside band
    able2 = jax.random.bernoulli(k_able2, 0.5, (N2,))
    trigger2 = jax.random.uniform(k_trig2, (hi2 - lo2,), dtype=jnp.float32)

    ref2 = _reference(x2, able2, trigger_range2, trigger2)
    out2 = jax.block_until_ready(
        trigger_selected_node_forward(x2, able2, trigger_range2, trigger2, max_tile_rows=48))
    assert jnp.allclose(out2, ref2, atol=1e-6), "test 2 mismatch vs reference"

    print("KERNEL_OK")
</pallas_src>

<mosaic_0001>
module attributes {stable_mosaic.version = 11 : i64} {
  func.func @_trigger_kernel(%arg0: i32, %arg1: i32, %arg2: memref<16x256xf32, #tpu.memory_space<vmem>>, %arg3: memref<16x1xf32, #tpu.memory_space<vmem>>, %arg4: memref<1x256xf32, #tpu.memory_space<vmem>>, %arg5: memref<1x256xf32, #tpu.memory_space<vmem>>, %arg6: memref<16x256xf32, #tpu.memory_space<vmem>>) attributes {dimension_semantics = [#tpu.dimension_semantics<parallel>, #tpu.dimension_semantics<parallel>], iteration_bounds = array<i64: 1, 1>, scalar_prefetch = 0 : i64, scratch_operands = 0 : i64, tpu.core_type = #tpu.core_type<tc>, window_params = [{transform_indices = @transform_0, window_bounds = array<i64: 16, 256>}, {transform_indices = @transform_1, window_bounds = array<i64: 16, 1>}, {transform_indices = @transform_2, window_bounds = array<i64: 1, 256>}, {transform_indices = @transform_3, window_bounds = array<i64: 1, 256>}, {transform_indices = @transform_4, window_bounds = array<i64: 16, 256>}]} {
    %c0 = arith.constant 0 : index
    %c0_0 = arith.constant 0 : index
    %0 = vector.load %arg2[%c0, %c0_0] : memref<16x256xf32, #tpu.memory_space<vmem>>, vector<16x256xf32>
    %c0_1 = arith.constant 0 : index
    %c0_2 = arith.constant 0 : index
    %1 = vector.load %arg3[%c0_1, %c0_2] : memref<16x1xf32, #tpu.memory_space<vmem>>, vector<16x1xf32>
    %c0_3 = arith.constant 0 : index
    %c0_4 = arith.constant 0 : index
    %2 = vector.load %arg5[%c0_3, %c0_4] : memref<1x256xf32, #tpu.memory_space<vmem>>, vector<1x256xf32>
    %3 = vector.broadcast %1 : vector<16x1xf32> to vector<16x256xf32>
    %4 = vector.broadcast %2 : vector<1x256xf32> to vector<16x256xf32>
    %5 = arith.mulf %3, %4 : vector<16x256xf32>
    %c0_5 = arith.constant 0 : index
    %c0_6 = arith.constant 0 : index
    %6 = vector.load %arg4[%c0_5, %c0_6] : memref<1x256xf32, #tpu.memory_space<vmem>>, vector<1x256xf32>
    %7 = vector.broadcast %6 : vector<1x256xf32> to vector<16x256xf32>
    %8 = arith.addf %0, %7 : vector<16x256xf32>
    %cst = arith.constant 1.000000e+00 : f32
    %9 = vector.broadcast %cst : f32 to vector<16x256xf32>
    %10 = arith.minimumf %8, %9 : vector<16x256xf32>
    %11 = arith.mulf %10, %5 : vector<16x256xf32>
    %cst_7 = arith.constant 1.000000e+00 : f32
    %12 = vector.broadcast %cst_7 : f32 to vector<16x256xf32>
    %13 = arith.subf %12, %5 : vector<16x256xf32>
    %14 = arith.mulf %0, %13 : vector<16x256xf32>
    %15 = arith.addf %11, %14 : vector<16x256xf32>
    %c0_8 = arith.constant 0 : index
    %c0_9 = arith.constant 0 : index
    %16 = vector.load %arg6[%c0_8, %c0_9] : memref<16x256xf32, #tpu.memory_space<vmem>>, vector<16x256xf32>
    tpu.vector_store %arg6[%c0_8, %c0_9], %15 {strides = array<i32>} : memref<16x256xf32, #tpu.memory_space<vmem>>, vector<16x256xf32>,
    return
  }
  func.func @transform_0(%arg0: i32, %arg1: i32) -> (i32, i32) {
    %c0_i32 = arith.constant 0 : i32
    %0 = arith.addi %c0_i32, %arg1 : i32
    %c0_i32_0 = arith.constant 0 : i32
    return %arg0, %0 : i32, i32
  }
  func.func @transform_1(%arg0: i32, %arg1: i32) -> (i32, i32) {
    %c0_i32 = arith.constant 0 : i32
    %c0_i32_0 = arith.constant 0 : i32
    return %arg0, %c0_i32 : i32, i32
  }
  func.func @transform_2(%arg0: i32, %arg1: i32) -> (i32, i32) {
    %c0_i32 = arith.constant 0 : i32
    %c0_i32_0 = arith.constant 0 : i32
    return %c0_i32, %arg1 : i32, i32
  }
  func.func @transform_3(%arg0: i32, %arg1: i32) -> (i32, i32) {
    %c0_i32 = arith.constant 0 : i32
    %c0_i32_0 = arith.constant 0 : i32
    return %c0_i32, %arg1 : i32, i32
  }
  func.func @transform_4(%arg0: i32, %arg1: i32) -> (i32, i32) {
    %c0_i32 = arith.constant 0 : i32
    %0 = arith.addi %c0_i32, %arg1 : i32
    %c0_i32_0 = arith.constant 0 : i32
    return %arg0, %0 : i32, i32
  }
}

</mosaic_0001>

<bundles_post_ra>
// kernel: tpu_custom_call.1
= control target key start
LH: loop header
LB: loop body
LE: loop exit
PB: predicated region body
PF: predicated region fallthrough
CT: control target
= control target key end

     0   :  { %9 = vsyncpa [#allocation3], 0  ;;  %s247_s0 = inlined_call_operand.hbm [shape: f32[16,256], index: 0, kind: input, shape index: {}, may-alias: {0,4}]   ;;  %s248_s1 = inlined_call_operand.vmem [shape: f32[16,1], index: 1, kind: input, shape index: {}]   ;;  %s249_s2 = inlined_call_operand.vmem [shape: f32[1,256], index: 2, kind: input, shape index: {}]   ;;  %s250_s3 = inlined_call_operand.vmem [shape: f32[1,256], index: 3, kind: input, shape index: {}]   ;;  %s251_s4 = inlined_call_operand.hbm [shape: f32[16,256], index: 4, kind: output, shape index: {}, may-alias: {0,4}]  }
   0x1   :  { %10 = vsyncpa [#allocation4], 0  ;;  %s175_s15 = smov [#allocation2]   ;;  %s127_s19 = scalar_lea.hbm %s247_s0, 512 }
   0x2   :  { %s16_s16 = sshll.u32 %s175_s15, 4  ;;  %p128_p0 = scmp.ne.s32.totalorder %s247_s0, %s127_s19  ;;  %s17_s16 = int_to_ptr.vmem [resolvable:$true] %s16_s16 }
   0x3   :  { %p131_p1 = scmp.lt.u32.totalorder %s127_s19, %s247_s0 }
   0x5   :  { %p133_p2 = pnand %p131_p1, %p128_p0 }
   0x7   :  { %136 = shalt.err (!%p133_p2)
}
   0x8   :  { %s137_s24 = scalar_lea.vmem %s17_s16, 512  ;;  %p142_p4 = scmp.lt.s32.totalorder %s17_s16, %s17_s16 }
   0x9   :  { %p138_p3 = scmp.ne.s32.totalorder %s17_s16, %s137_s24  ;;  %p143_p5 = scmp.lt.s32.totalorder %s137_s24, %s137_s24 }
   0xb   :  { %p144_p6 = por %p143_p5, %p142_p4 }
   0xd   :  { %p145_p7 = pnand %p144_p6, %p138_p3 }
   0xf   :  { %148 = shalt.err (!%p145_p7)
}
  0x10   :  { %s176_s25 = smov 256   ;;  %s177_s26 = smov 16  }
  0x11   :  { %22 = dma.hbm_to_vmem [thread:$0]  %s247_s0, 512, %s17_s16, [#allocation3], %s176_s25, %s176_s25, %s177_s26  }
  0x12   :  { %171 = dma.done.wait [#allocation3], 512  }
  0x13   :  { %172 = vsyncadd [#allocation3], 4294966784  ;;  %v178_v0 = vmov 0   ;;  %v36_v1 = vld [vmem:[%s248_s1] sm:$0xff]  ;;  %v37_v2 = vld [vmem:[%s248_s1 + $0x8] sm:$0xff]  ;;  %v50_v3 = vlaneseq  ;;  %s179_s1 = smov [#allocation5]  }
  0x14   :  { %126 = vset.pattern.permute.xlu0 %v178_v0  ;;  %v64_v7 = vld [vmem:[%s249_s2] sm:$0x3]  ;;  %v33_v11 = vld [vmem:[#allocation2 + $0x8] sm:$0xff]  ;;  %v34_v17 = vld [vmem:[#allocation2 + $0x10] sm:$0xff]  ;;  %s109_s2 = sshll.u32 %s179_s1, 4  ;;  %s110_s2 = int_to_ptr.vmem [resolvable:$true] %s109_s2 }
  0x15   :  { %41 = vperm.xlu0 %126, %v36_v1   ;;  %v51_v4 = vshrl.u32 %v50_v3, 7  ;;  %v32_v10 = vld [vmem:[#allocation2] sm:$0xff]  ;;  %v35_v18 = vld [vmem:[#allocation2 + $0x18] sm:$0xff]  ;;  %p154_p9 = scmp.lt.s32.totalorder %s110_s2, %s110_s2 }
  0x16   :  { %v38_v12 = vld [vmem:[%s250_s3] sm:$0x3]  ;;  %s149_s3 = scalar_lea.vmem %s110_s2, 512 }
  0x17   :  { %v52_v5 = vsub.s32 0, %v51_v4  ;;  %v56_v6 = vsub.s32 1, %v51_v4  ;;  %p150_p8 = scmp.ne.s32.totalorder %s110_s2, %s149_s3  ;;  %p155_p10 = scmp.lt.s32.totalorder %s149_s3, %s149_s3 }
  0x19   :  { %46 = vperm.xlu0 %126, %v37_v2   ;;  %v69_v8 = vrot.slane %v64_v7, %v52_v5  ;;  %v73_v9 = vrot.slane %v64_v7, %v56_v6  ;;  %v53_v15 = vrot.slane %v38_v12, %v52_v5  ;;  %v57_v16 = vrot.slane %v38_v12, %v56_v6  ;;  %p156_p11 = por %p155_p10, %p154_p9 }
  0x1b   :  { %v76_v13 = vadd.f32 %v69_v8, %v32_v10  ;;  %v77_v14 = vadd.f32 %v73_v9, %v33_v11  ;;  %v78_v24 = vadd.f32 %v69_v8, %v34_v17  ;;  %v79_v25 = vadd.f32 %v73_v9, %v35_v18  ;;  %p157_p12 = pnand %p156_p11, %p150_p8 }
  0x1d   :  { %v80_v20 = vmin.f32 %v76_v13, 1.0  ;;  %v81_v21 = vmin.f32 %v77_v14, 1.0  ;;  %v82_v35 = vmin.f32 %v78_v24, 1.0  ;;  %v83_v36 = vmin.f32 %v79_v25, 1.0 }
  0x94   :  { %v42_v19 = vpop.permute.xlu0 %41 }
  0x95   :  { %v60_v22 = vmul.f32 %v53_v15, %v42_v19  ;;  %v61_v23 = vmul.f32 %v57_v16, %v42_v19 }
  0x97   :  { %v88_v26 = vsub.f32 1.0, %v60_v22  ;;  %v89_v27 = vsub.f32 1.0, %v61_v23  ;;  %v84_v28 = vmul.f32 %v80_v20, %v60_v22  ;;  %v85_v29 = vmul.f32 %v81_v21, %v61_v23 }
  0x98   :  { %v47_v30 = vpop.permute.xlu0 %46 }
  0x99   :  { %v92_v31 = vmul.f32 %v88_v26, %v32_v10  ;;  %v93_v32 = vmul.f32 %v89_v27, %v33_v11  ;;  %v62_v33 = vmul.f32 %v53_v15, %v47_v30  ;;  %v63_v34 = vmul.f32 %v57_v16, %v47_v30 }
  0x9b   :  { %v96_v37 = vadd.f32 %v92_v31, %v84_v28  ;;  %v97_v38 = vadd.f32 %v93_v32, %v85_v29  ;;  %v90_v39 = vsub.f32 1.0, %v62_v33  ;;  %v91_v40 = vsub.f32 1.0, %v63_v34 }
  0x9c   :  { %v86_v41 = vmul.f32 %v82_v35, %v62_v33  ;;  %v87_v42 = vmul.f32 %v83_v36, %v63_v34 }
  0x9d   :  { %100 = vst [vmem:[#allocation5] sm:$0xff] %v96_v37  ;;  %101 = vst [vmem:[#allocation5 + $0x8] sm:$0xff] %v97_v38  ;;  %v94_v43 = vmul.f32 %v90_v39, %v34_v17  ;;  %v95_v44 = vmul.f32 %v91_v40, %v35_v18 }
  0x9f   :  { %v98_v45 = vadd.f32 %v94_v43, %v86_v41  ;;  %v99_v46 = vadd.f32 %v95_v44, %v87_v42 }
  0xa1   :  { %102 = vst [vmem:[#allocation5 + $0x10] sm:$0xff] %v98_v45  ;;  %103 = vst [vmem:[#allocation5 + $0x18] sm:$0xff] %v99_v46 }
  0xa2   :  { %160 = shalt.err (!%p157_p12)
}
  0xa3   :  { %s161_s12 = scalar_lea.hbm %s251_s4, 512 }
  0xa4   :  { %p162_p13 = scmp.ne.s32.totalorder %s251_s4, %s161_s12  ;;  %p165_p0 = scmp.lt.u32.totalorder %s161_s12, %s251_s4 }
  0xa6   :  { %p167_p1 = pnand %p165_p0, %p162_p13 }
  0xa8   :  { %170 = shalt.err (!%p167_p1)
}
  0xa9   :  { %115 = dma.vmem_to_hbm [thread:$0]  %s110_s2, 512, %s251_s4, [#allocation4], %s176_s25, %s176_s25, %s177_s26  }
  0xaa   :  { %173 = dma.done.wait [#allocation4], 512  }
  0xab   :  { %174 = vsyncadd [#allocation4], 4294966784 }
  0xac   :  { %119 = vsyncpa [#allocation3], 1 }
  0xad   :  { %120 = vsyncpa [#allocation4], 1 }

</bundles_post_ra>
